<compile_context>
chip_gen: v6e
topology: v6e:2x2x1
jax: 0.10.0
libtpu: 0.0.40
codegen_flags: <defaults>
</compile_context>

<pallas_src>
import functools
import math

import jax
import jax.numpy as jnp
from jax.experimental import pallas as pl
from jax.experimental.pallas import tpu as pltpu


def layernorm_kernel(x_ref, gamma_ref, beta_ref, o_ref, *, eps):
    # x_ref: (tm, D); gamma_ref/beta_ref: (1, D); o_ref: (tm, D)
    x = x_ref[...].astype(jnp.float32)
    d = x.shape[-1]

    mean = jnp.mean(x, axis=-1, keepdims=True)
    xc = x - mean
    # torch.std is unbiased by default (divides by N-1).
    var = jnp.sum(xc * xc, axis=-1, keepdims=True) * (1.0 / (d - 1))
    std = jnp.sqrt(var) + eps

    # Per-row reciprocal (EUP slot, D-fold fewer ops than a full-tile divide).
    # Two Newton-Raphson refinements on the (tm, 1) column restore full f32
    # accuracy from the approximate vrcp at negligible cost.
    inv = pl.reciprocal(std, approx=True)
    inv = inv * (2.0 - std * inv)
    inv = inv * (2.0 - std * inv)

    gamma = gamma_ref[...].astype(jnp.float32)
    beta = beta_ref[...].astype(jnp.float32)
    y = (xc * inv) * gamma + beta
    o_ref[...] = y.astype(o_ref.dtype)


def _round_up(x, m):
    return ((x + m - 1) // m) * m


def layer_norm(x, a_2, b_2, *, eps=1e-6, target_block_bytes=2 * 1024 * 1024):
    """LayerNorm over the last dim of x. x: (..., D); a_2, b_2: (D,)."""
    orig_shape = x.shape
    D = orig_shape[-1]
    M = int(math.prod(orig_shape[:-1]))

    x2d = x.reshape(M, D)
    gamma2d = a_2.reshape(1, D)
    beta2d = b_2.reshape(1, D)

    itemsize = jnp.dtype(x.dtype).itemsize
    # Dtype-aware packed-sublane multiple: 8 (f32), 16 (bf16), 32 (int8/fp8).
    sub = max(8, 32 // itemsize)

    # Byte-budget tile sizing: ~2 MiB per input block, rounded down to the
    # sublane multiple, clamped to what M actually needs.
    tm_budget = max(sub, (target_block_bytes // (D * itemsize)) // sub * sub)
    tm_cap = _round_up(M, sub)
    tm_eff = min(tm_budget, tm_cap)
    # Keep >= 2 grid steps when there is enough work so the 1-D "parallel"
    # grid can shard across v7x's two TensorCores (no-op on v5e/v6e).
    if tm_eff >= tm_cap and M > sub:
        tm_eff = min(tm_eff, _round_up(-(-M // 2), sub))
    num_tiles = pl.cdiv(M, tm_eff)
    # Ragged tail (M % tm_eff != 0): Pallas issues a partial last block; rows
    # past M are never written back, so no wrapper-side pad/slice is needed.

    tile_bytes = tm_eff * D * itemsize
    # Double-buffered in + out tiles, params, f32 temporaries headroom.
    needed = 2 * 2 * tile_bytes + 4 * D * itemsize + 3 * tm_eff * D * 4
    vmem_limit = int(min(max(needed + needed // 2, 32 * 1024 * 1024),
                         48 * 1024 * 1024))  # stay under v7x's 64 MiB VMEM

    cost = pl.CostEstimate(
        flops=10 * M * D,                      # mean, center, square, scale, shift
        transcendentals=2 * M,                 # sqrt + reciprocal per row
        bytes_accessed=2 * M * D * itemsize + 2 * D * itemsize,
    )

    out = pl.pallas_call(
        functools.partial(layernorm_kernel, eps=eps),
        out_shape=jax.ShapeDtypeStruct((M, D), x.dtype),
        grid_spec=pltpu.PrefetchScalarGridSpec(
            num_scalar_prefetch=0,
            grid=(num_tiles,),
            in_specs=[
                pl.BlockSpec((tm_eff, D), lambda i: (i, 0)),  # x row tile
                pl.BlockSpec((1, D), lambda i: (0, 0)),       # a_2 (gamma)
                pl.BlockSpec((1, D), lambda i: (0, 0)),       # b_2 (beta)
            ],
            out_specs=pl.BlockSpec((tm_eff, D), lambda i: (i, 0)),
        ),
        compiler_params=pltpu.CompilerParams(
            dimension_semantics=("parallel",),
            vmem_limit_bytes=vmem_limit,
        ),
        cost_estimate=cost,
    )(x2d, gamma2d, beta2d)

    return out.reshape(orig_shape)


if __name__ == "__main__":
    # Small shapes consistent with the module's forward: (batch, seq, d_model).
    # d_model=128 keeps the output last dim lane-dense (multiple of 128).
    batch, seq, d_model = 2, 8, 128
    eps = 1e-6

    key = jax.random.PRNGKey(0)
    kx, kg, kb = jax.random.split(key, 3)

    x = jax.random.normal(kx, (batch, seq, d_model), dtype=jnp.float32)
    # Module initializes a_2=ones, b_2=zeros; use random values to exercise the
    # full affine path (still deterministic).
    a_2 = 1.0 + 0.1 * jax.random.normal(kg, (d_model,), dtype=jnp.float32)
    b_2 = 0.1 * jax.random.normal(kb, (d_model,), dtype=jnp.float32)

    out = layer_norm(x, a_2, b_2, eps=eps)
    out = jax.block_until_ready(out)

    # Pure-JAX reference (matches torch: unbiased std, eps added to std).
    mean = x.mean(-1, keepdims=True)
    std = jnp.std(x, axis=-1, keepdims=True, ddof=1) + eps
    ref = a_2 * (x - mean) / std + b_2

    assert out.shape == (batch, seq, d_model)
    assert jnp.allclose(out, ref, atol=1e-5, rtol=1e-5)

    print("KERNEL_OK")
</pallas_src>

<mosaic_0001>
module attributes {stable_mosaic.version = 11 : i64} {
  func.func @layernorm_kernel(%arg0: i32, %arg1: memref<8x128xf32, #tpu.memory_space<vmem>>, %arg2: memref<1x128xf32, #tpu.memory_space<vmem>>, %arg3: memref<1x128xf32, #tpu.memory_space<vmem>>, %arg4: memref<8x128xf32, #tpu.memory_space<vmem>>) attributes {dimension_semantics = [#tpu.dimension_semantics<parallel>], iteration_bounds = array<i64: 2>, scalar_prefetch = 0 : i64, scratch_operands = 0 : i64, tpu.core_type = #tpu.core_type<tc>, window_params = [{transform_indices = @transform_0, window_bounds = array<i64: 8, 128>}, {pipeline_mode = #tpu.pipeline_mode<synchronous>, transform_indices = @transform_1, window_bounds = array<i64: 1, 128>}, {pipeline_mode = #tpu.pipeline_mode<synchronous>, transform_indices = @transform_2, window_bounds = array<i64: 1, 128>}, {transform_indices = @transform_3, window_bounds = array<i64: 8, 128>}]} {
    %c0 = arith.constant 0 : index
    %c0_0 = arith.constant 0 : index
    %0 = vector.load %arg1[%c0, %c0_0] : memref<8x128xf32, #tpu.memory_space<vmem>>, vector<8x128xf32>
    %cst = arith.constant dense<0.000000e+00> : vector<8xf32>
    %1 = vector.multi_reduction <add>, %0, %cst [1] : vector<8x128xf32> to vector<8xf32>
    %2 = vector.shape_cast %1 : vector<8xf32> to vector<8x1xf32>
    %cst_1 = arith.constant 1.280000e+02 : f32
    %3 = vector.broadcast %cst_1 : f32 to vector<8x1xf32>
    %4 = arith.divf %2, %3 : vector<8x1xf32>
    %5 = vector.broadcast %4 : vector<8x1xf32> to vector<8x128xf32>
    %6 = arith.subf %0, %5 : vector<8x128xf32>
    %7 = arith.mulf %6, %6 : vector<8x128xf32>
    %cst_2 = arith.constant dense<0.000000e+00> : vector<8xf32>
    %8 = vector.multi_reduction <add>, %7, %cst_2 [1] : vector<8x128xf32> to vector<8xf32>
    %9 = vector.shape_cast %8 : vector<8xf32> to vector<8x1xf32>
    %cst_3 = arith.constant 0.00787401571 : f32
    %10 = vector.broadcast %cst_3 : f32 to vector<8x1xf32>
    %11 = arith.mulf %9, %10 : vector<8x1xf32>
    %12 = math.sqrt %11 : vector<8x1xf32>
    %cst_4 = arith.constant 9.99999997E-7 : f32
    %13 = vector.broadcast %cst_4 : f32 to vector<8x1xf32>
    %14 = arith.addf %12, %13 : vector<8x1xf32>
    %15 = tpu.reciprocal %14 {approx = true} : vector<8x1xf32> -> vector<8x1xf32>
    %16 = arith.mulf %14, %15 : vector<8x1xf32>
    %cst_5 = arith.constant 2.000000e+00 : f32
    %17 = vector.broadcast %cst_5 : f32 to vector<8x1xf32>
    %18 = arith.subf %17, %16 : vector<8x1xf32>
    %19 = arith.mulf %15, %18 : vector<8x1xf32>
    %20 = arith.mulf %14, %19 : vector<8x1xf32>
    %cst_6 = arith.constant 2.000000e+00 : f32
    %21 = vector.broadcast %cst_6 : f32 to vector<8x1xf32>
    %22 = arith.subf %21, %20 : vector<8x1xf32>
    %23 = arith.mulf %19, %22 : vector<8x1xf32>
    %c0_7 = arith.constant 0 : index
    %c0_8 = arith.constant 0 : index
    %24 = vector.load %arg2[%c0_7, %c0_8] : memref<1x128xf32, #tpu.memory_space<vmem>>, vector<1x128xf32>
    %c0_9 = arith.constant 0 : index
    %c0_10 = arith.constant 0 : index
    %25 = vector.load %arg3[%c0_9, %c0_10] : memref<1x128xf32, #tpu.memory_space<vmem>>, vector<1x128xf32>
    %26 = vector.broadcast %23 : vector<8x1xf32> to vector<8x128xf32>
    %27 = arith.mulf %6, %26 : vector<8x128xf32>
    %28 = vector.broadcast %24 : vector<1x128xf32> to vector<8x128xf32>
    %29 = arith.mulf %27, %28 : vector<8x128xf32>
    %30 = vector.broadcast %25 : vector<1x128xf32> to vector<8x128xf32>
    %31 = arith.addf %29, %30 : vector<8x128xf32>
    %c0_11 = arith.constant 0 : index
    %c0_12 = arith.constant 0 : index
    %32 = vector.load %arg4[%c0_11, %c0_12] : memref<8x128xf32, #tpu.memory_space<vmem>>, vector<8x128xf32>
    tpu.vector_store %arg4[%c0_11, %c0_12], %31 {strides = array<i32>} : memref<8x128xf32, #tpu.memory_space<vmem>>, vector<8x128xf32>,
    return
  }
  func.func @transform_0(%arg0: i32) -> (i32, i32) {
    %c0_i32 = arith.constant 0 : i32
    %c0_i32_0 = arith.constant 0 : i32
    return %arg0, %c0_i32 : i32, i32
  }
  func.func @transform_1(%arg0: i32) -> (i32, i32) {
    %c0_i32 = arith.constant 0 : i32
    %c0_i32_0 = arith.constant 0 : i32
    %c0_i32_1 = arith.constant 0 : i32
    return %c0_i32, %c0_i32_0 : i32, i32
  }
  func.func @transform_2(%arg0: i32) -> (i32, i32) {
    %c0_i32 = arith.constant 0 : i32
    %c0_i32_0 = arith.constant 0 : i32
    %c0_i32_1 = arith.constant 0 : i32
    return %c0_i32, %c0_i32_0 : i32, i32
  }
  func.func @transform_3(%arg0: i32) -> (i32, i32) {
    %c0_i32 = arith.constant 0 : i32
    %c0_i32_0 = arith.constant 0 : i32
    return %arg0, %c0_i32 : i32, i32
  }
}

</mosaic_0001>

<bundles_post_ra>
// kernel: tpu_custom_call.1
= control target key start
LH: loop header
LB: loop body
LE: loop exit
PB: predicated region body
PF: predicated region fallthrough
CT: control target
= control target key end

     0   :  { %8 = vsyncpa [#allocation3], 0  ;;  %s644_s0 = inlined_call_operand.hbm [shape: f32[16,128], index: 0, kind: input, shape index: {}]   ;;  %s645_s1 = inlined_call_operand.vmem [shape: f32[1,128], index: 1, kind: input, shape index: {}]   ;;  %s646_s2 = inlined_call_operand.vmem [shape: f32[1,128], index: 2, kind: input, shape index: {}]   ;;  %s647_s3 = inlined_call_operand.hbm [shape: f32[16,128], index: 3, kind: output, shape index: {}]  }
   0x1   :  { %10 = vsyncpa [#allocation3 + $0x1], 0 }
   0x2   :  { %11 = vsyncpa [#allocation4], 0 }
   0x3   :  { %13 = vsyncpa [#allocation4 + $0x1], 0  ;;  %s493_s12 = smov 0   ;;  %s495_s13 = smov 0  }
   0x4   :  { %s497_s14 = smov 0   ;;  %s499_s15 = smov 0  }
   0x5 LB: > { %s514_s16 = sadd.s32 4294967295, %s469_s15   ;;  %s313_s17 = sadd.s32 4294967294, %s469_s15   ;;  %s469_s15 = sphi %s499_s15, %s664_s15   ;;  %s465_s14 = sphi %s497_s14, %s663_s14   ;;  %s461_s13 = sphi %s495_s13, %s662_s13   ;;  %s457_s12 = sphi %s493_s12, %s661_s12  }
   0x6   : > { %s518_s18 = sadd.s32 1, %s469_s15   ;;  %s26_s19 = sadd.s32 1, %s465_s14 }
   0x7   : > { %s23_s20 = ssub.s32 %s469_s15, %s518_s18  ;;  %p33_p0 = scmp.ne.s32.totalorder %s465_s14, %s461_s13 }
   0x8   : > { %p24_p1 = scmp.eq.s32.totalorder %s23_s20, 0  ;;  %p34_p2 = scmp.eq.s32.totalorder %s469_s15, 0 }
   0x9   : > { %p39_p3 = scmp.ne.s32.totalorder %s461_s13, %s457_s12  ;;  %p40_p4 = scmp.eq.s32.totalorder %s514_s16, 0 }
   0xa   : > { %s530_s21 = scalar_select %p24_p1, %s465_s14, %s26_s19  }
   0xb   : > { %p532_p5 = por %p34_p2, %p33_p0  ;;  %p536_p6 = por %p40_p4, %p39_p3 }
   0xc   : > { %p105_p7 = scmp.eq.s32.totalorder %s514_s16, 1  ;;  %p111_p8 = scmp.eq.s32.totalorder %s313_s17, 1 }
   0xd   : > { %s651_s23 = scalar_select %p536_p6, 1, 0 }
   0xe   : > { %p339_p10 = scmp.lt.s32.totalorder %s469_s15, 2  ;;  %p543_p11 = por %p105_p7, %p33_p0 }
   0xf   : > { %p547_p12 = por %p111_p8, %p39_p3  ;;  %s137_s26 = sand.u32 1, %s465_s14  }
  0x10   : > { %s652_s24 = scalar_select %p543_p11, 1, 0 }
  0x11   : > { %s653_s25 = scalar_select %p547_p12, 1, 0 }
  0x12   : > { %s317_s27 = sshll.u32 %s469_s15, 7  ;;  %s316_s28 = sshll.u32 %s137_s26, 3 }
  0x13   : > { %s556_s4 = scalar_lea.hbm %s644_s0, %s317_s27  ;;  %s141_s5 = scalar_lea.vmem [#allocation2], %s316_s28 }
  0x14   : > { %s148_s6 = sshll.u32 %s141_s5, 4  ;;  %p560_p13 = pnand %p339_p10, %p532_p5  ;;  %s564_s6 = int_to_ptr.vmem [resolvable:$true] %s148_s6 }
  0x15   : > { %s138_s8 = scalar_lea.sflag [#allocation3], %s137_s26  ;;  %s377_s9 = scalar_lea.hbm %s556_s4, 128 }
  0x16   : > { %p378_p2 = scmp.ne.s32.totalorder %s556_s4, %s377_s9  ;;  %p379_p3 = pneg %p560_p13 }
  0x17   : > { %s382_s17 = scalar_lea.hbm %s644_s0, 256  ;;  %p383_p5 = scmp.lt.s32.totalorder %s556_s4, %s644_s0 }
  0x18   : > { %p380_p4 = pnand %p379_p3, %p378_p2  ;;  %p384_p8 = scmp.lt.s32.totalorder %s382_s17, %s377_s9 }
  0x1a   : > { %p381_p7 = pneg %p380_p4  ;;  %p385_p10 = por %p384_p8, %p383_p5 }
  0x1c   : > { %p386_p9 = pnand %p385_p10, %p381_p7 }
  0x1e   : > { %389 = shalt.err (!%p386_p9)
}
  0x1f   : > { %s390_s22 = scalar_lea.vmem %s564_s6, 128  ;;  %s471_s26 = smov [#allocation2]  }
  0x20   : > { %p391_p0 = scmp.ne.s32.totalorder %s564_s6, %s390_s22  ;;  %s395_s27 = sshll.u32 %s471_s26, 4  ;;  %s396_s27 = int_to_ptr.vmem [resolvable:$false] %s395_s27 }
  0x21   : > { %s397_s28 = scalar_lea.vmem %s396_s27, 256  ;;  %p398_p4 = scmp.lt.s32.totalorder %s564_s6, %s396_s27 }
  0x22   : > { %p393_p1 = pnand %p391_p0, %p379_p3  ;;  %p399_p12 = scmp.lt.s32.totalorder %s397_s28, %s390_s22 }
  0x24   : > { %p394_p2 = pneg %p393_p1  ;;  %p400_p11 = por %p399_p12, %p398_p4 }
  0x26   : > { %p401_p6 = pnand %p400_p11, %p394_p2 }
  0x28   : > { %404 = shalt.err (!%p401_p6)
}
  0x29   : > { %334 = dma.hbm_to_vmem [thread:$0]  (!%p560_p13), %s556_s4, 128, %s564_s6, %s138_s8  }
  0x2a   : > { %p655_p9 = scmp.lt.s32.totalorder %s469_s15, 3  ;;  %p656_p7 = scmp.ge.s32.totalorder %s469_s15, 1 }
  0x2c   : > { %p154_p0 = pnand %p656_p7, %p655_p9 }
  0x2d   : > { %s591_s29 = sand.u32 (!%p154_p0), 1, %s461_s13   ;;  %p657_p6 = scmp.ne.s32.totalorder (!%p154_p0), %s651_s23, 0 }
  0x2e   : > { %157 = sbr.rel (%p154_p0) target bundleno = 402 (0x192), region = 32  ;;  %s319_s30 = sshll.u32 (!%p154_p0), %s591_s29, 3 }
  0x2f   : > { %s160_s5 = scalar_lea.sflag (!%p154_p0), [#allocation3], %s591_s29  ;;  %s163_s7 = scalar_lea.vmem (!%p154_p0), [#allocation2], %s319_s30 }
  0x33   : > { %448 = dma.done.wait (%p657_p6), %s160_s5, 128  }
  0x34   : > { %450 = vsyncadd (%p657_p6), %s160_s5, 4294967168  ;;  %v186_v0 = vld [vmem:[%s163_s7] sm:$0xff]  ;;  %s324_s9 = sshll.u32 %s514_s16, 7  ;;  %s185_s10 = scalar_lea.vmem [#allocation5], %s319_s30 }
  0x35   : > { %187 = vadd.xlane.f32.xlu0 %v186_v0  ;;  %v321_v20 = vld [vmem:[%s645_s1] ss:$0 sm:$0xff]  ;;  %s243_s11 = sshll.u32 %s185_s10, 4  ;;  %s241_s20 = scalar_lea.hbm %s647_s3, %s324_s9  ;;  %s244_s11 = int_to_ptr.vmem [resolvable:$true] %s243_s11 }
  0x36   : > { %v322_v22 = vld [vmem:[%s646_s2] ss:$0 sm:$0xff]  ;;  %s230_s22 = scalar_lea.sflag [#allocation4], %s591_s29  ;;  %s405_s26 = scalar_lea.vmem %s244_s11, 128 }
  0x37   : > { %p406_p11 = scmp.ne.s32.totalorder %s244_s11, %s405_s26  ;;  %p658_p12 = scmp.ne.s32.totalorder %s652_s24, 0 }
  0x38   : > { %s472_s27 = smov [#allocation5]  }
  0x39   : > { %p407_p13 = pnand %p406_p11, %p658_p12  ;;  %s409_s28 = sshll.u32 %s472_s27, 4  ;;  %s410_s28 = int_to_ptr.vmem [resolvable:$false] %s409_s28 }
  0x3a   : > { %s411_s16 = scalar_lea.vmem %s410_s28, 256  ;;  %p412_p3 = scmp.lt.s32.totalorder %s244_s11, %s410_s28 }
  0x3b   : > { %p408_p1 = pneg %p407_p13  ;;  %p413_p5 = scmp.lt.s32.totalorder %s411_s16, %s405_s26 }
  0x3d   : > { %p414_p8 = por %p413_p5, %p412_p3 }
  0x3f   : > { %p415_p10 = pnand %p414_p8, %p408_p1 }
  0xbe   : > { %v188_v1 = vpop.xlane.xlu0 %187 }
  0xbf   : > { %v190_v2 = vmul.f32 0.0078125, %v188_v1 }
  0xc1   : > { %v191_v3 = vsub.f32 %v186_v0, %v190_v2 }
  0xc3   : > { %v192_v4 = vmul.f32 %v191_v3, %v191_v3 }
  0xc5   : > { %193 = vadd.xlane.f32.xlu0 %v192_v4 }
 0x14e   : > { %v194_v5 = vpop.xlane.xlu0 %193 }
 0x14f   : > { %v195_v6 = vmul.f32 0.007874016, %v194_v5 }
 0x151   : > { %373 = vrsqrt.f32 %v195_v6  ;;  %vm198_vm0 = vcmp.eq.f32.partialorder %v195_v6, inf  ;;  %v201_v9 = vand.u32 2147483648, %v195_v6  ;;  %vm200_vm1 = vcmp.eq.f32.partialorder %v195_v6, 0.0 }
 0x15e   : > { %v374_v7 = vpop.eup %373 }
 0x15f   : > { %v197_v8 = vmul.f32 %v374_v7, %v195_v6 }
 0x161   : > { %v199_v10 = vsel %vm198_vm0, %v195_v6, %v197_v8 }
 0x162   : > { %v202_v11 = vsel %vm200_vm1, %v201_v9, %v199_v10 }
 0x163   : > { %v203_v12 = vadd.f32 1e-06, %v202_v11 }
 0x165   : > { %375 = vrcp.f32 %v203_v12 }
 0x172   : > { %v376_v13 = vpop.eup %375 }
 0x173   : > { %v205_v14 = vmul.f32 %v376_v13, %v203_v12 }
 0x175   : > { %v206_v15 = vsub.f32 2.0, %v205_v14 }
 0x177   : > { %v207_v16 = vmul.f32 %v376_v13, %v206_v15 }
 0x179   : > { %v208_v17 = vmul.f32 %v207_v16, %v203_v12 }
 0x17b   : > { %v209_v18 = vsub.f32 2.0, %v208_v17 }
 0x17d   : > { %v210_v19 = vmul.f32 %v209_v18, %v207_v16 }
 0x17f   : > { %v213_v21 = vmul.f32 %v210_v19, %v191_v3 }
 0x181   : > { %v220_v23 = vmul.f32 %v321_v20, %v213_v21 }
 0x183   : > { %v227_v24 = vadd.f32 %v322_v22, %v220_v23 }
 0x185   : > { %228 = vst [vmem:[%s185_s10] sm:$0xff] %v227_v24 }
 0x186   : > { %418 = shalt.err (!%p415_p10)
}
 0x187   : > { %s419_s30 = scalar_lea.hbm %s241_s20, 128  ;;  %s423_s7 = scalar_lea.hbm %s647_s3, 256 }
 0x188   : > { %p420_p2 = scmp.ne.s32.totalorder %s241_s20, %s419_s30  ;;  %p424_p7 = scmp.lt.s32.totalorder %s241_s20, %s647_s3 }
 0x189   : > { %p425_p0 = scmp.lt.s32.totalorder %s423_s7, %s419_s30 }
 0x18a   : > { %p421_p4 = pnand %p420_p2, %p658_p12 }
 0x18b   : > { %p426_p6 = por %p425_p0, %p424_p7 }
 0x18c   : > { %p422_p9 = pneg %p421_p4 }
 0x18e   : > { %p427_p11 = pnand %p426_p6, %p422_p9 }
 0x190   : > { %430 = shalt.err (!%p427_p11)
}
 0x191   : > { %329 = dma.vmem_to_hbm [thread:$0]  (%p658_p12), %s244_s11, 128, %s241_s20, %s230_s22  }
 0x192 PF: > { %s255_s6 = sand.u32 1, %s457_s12   ;;  %p659_p13 = scmp.ne.s32.totalorder %s653_s25, 0 }
 0x193   : > { %p660_p1 = scmp.ge.s32.totalorder %s469_s15, 2  ;;  %s256_s8 = scalar_lea.sflag [#allocation4], %s255_s6 }
 0x195   : > { %p336_p3 = pnand %p660_p1, %p659_p13 }
 0x197   : > { %p337_p5 = pneg %p336_p3 }
 0x199   : > { %452 = dma.done.wait (%p337_p5), %s256_s8, 128  }
 0x19a   : > { %454 = vsyncadd (%p337_p5), %s256_s8, 4294967168  ;;  %p16_p8 = scmp.ge.s32.totalorder %s518_s18, 4   ;;  %s661_s12 = smov %s461_s13 }
 0x19b   : > { %s662_s13 = smov %s465_s14  ;;  %s663_s14 = smov %s530_s21 }
 0x19c   : > { %s664_s15 = smov %s518_s18  ;;  %18 = sbr.rel (!%p16_p8) target bundleno = 5 (0x5), region = 77 }
 0x1a1   :  { %261 = vsyncpa [#allocation3], 1 }
 0x1a2   :  { %263 = vsyncpa [#allocation3 + $0x1], 1 }
 0x1a3   :  { %264 = vsyncpa [#allocation4], 1 }
 0x1a4   :  { %266 = vsyncpa [#allocation4 + $0x1], 1 }

</bundles_post_ra>
